<compile_context>
chip_gen: v7x
topology: tpu7x:2x2x1
jax: 0.10.0
libtpu: 0.0.40
codegen_flags: <defaults>
</compile_context>

<pallas_src>
import jax
import jax.numpy as jnp
from jax import lax
from jax.experimental import pallas as pl
from jax.experimental.pallas import tpu as pltpu


def net_kernel(ids_ref, wte_ref, w1_ref, b1_ref, wkq_ref, bkq_ref, out_ref, emb_scr):
    # ids_ref : (B*N,)     int32  SMEM  last-token ids, row-major (batch, word)
    # wte_ref : (V, E)     f32    VMEM  token-embedding table (GPT-embedding stand-in)
    # w1_ref  : (E, HP)    bf16         Linear(E -> H), lane-padded to HP = 128
    # b1_ref  : (1, HP)    f32
    # wkq_ref : (HP, 2*HP) bf16         [K | Q] fused, zero-padded
    # bkq_ref : (1, 2*HP)  f32
    # out_ref : (B, NCP)   f32          log-probs, class dim lane-padded to NCP = 128
    # emb_scr : (M_PAD,E)  f32    VMEM  gathered embeddings, rows padded to 16
    bn = ids_ref.shape[0]
    b_sz, _ = out_ref.shape
    n = bn // b_sz
    nc = n - 1
    hp = wkq_ref.shape[1] // 2

    # --- fused embedding gather (last-token lookup; stand-in for GPTEmbed) ----------
    emb_scr[...] = jnp.zeros_like(emb_scr)            # zero the padded rows
    for r in range(bn):                               # static unroll over B*N rows
        emb_scr[pl.ds(r, 1), :] = wte_ref[pl.ds(ids_ref[r], 1), :]

    emb = emb_scr[...].astype(jnp.bfloat16)           # (M_PAD, E)

    # --- gpt tail: Linear(E -> H) + ReLU  (bf16 MXU matmul, f32 accumulation) -------
    h = jnp.dot(emb, w1_ref[...], preferred_element_type=jnp.float32) + b1_ref[...]
    h = jnp.maximum(h, 0.0)                           # (M_PAD, HP) f32; padded lanes stay 0

    # --- fused K|Q projection: ONE MXU matmul for both heads ------------------------
    kq = jnp.dot(h.astype(jnp.bfloat16), wkq_ref[...],
                 preferred_element_type=jnp.float32) + bkq_ref[...]   # (M_PAD, 2*HP) f32

    # --- per-batch lemma/choice contraction + log_softmax ---------------------------
    out_ref[...] = jnp.zeros_like(out_ref)            # lane-dense init of padded block
    for b in range(b_sz):                             # static unroll over tiny batch
        k_lemma = kq[b * n:b * n + 1, :hp]            # (1, HP)   K(lemma_b)
        q_choice = kq[b * n + 1:b * n + n, hp:]       # (NC, HP)  Q(choices_b)
        # weights[c] = K(lemma) . Q(choice_c); padded hidden lanes are exactly zero.
        w = lax.dot_general(k_lemma, q_choice, (((1,), (1,)), ((), ())),
                            preferred_element_type=jnp.float32)       # (1, NC)
        m = jnp.max(w, axis=-1, keepdims=True)
        s = w - m
        lse = jnp.log(jnp.sum(jnp.exp(s), axis=-1, keepdims=True))
        out_ref[pl.ds(b, 1), pl.ds(0, nc)] = s - lse  # logits live in lanes [0, NC)


def prepare_params(params, hp=128):
    """One-time packing: pad hidden dim to 128 lanes, fuse K|Q, cast matmul weights bf16."""
    wte, w1, b1, wk, bk, wq, bq = params
    e, h = w1.shape

    def pad_cols(a, width):
        return jnp.pad(a, ((0, 0), (0, width - a.shape[1])))

    w1p = pad_cols(w1, hp).astype(jnp.bfloat16)                        # (E, HP)
    b1p = pad_cols(b1, hp).astype(jnp.float32)                         # (1, HP)
    wkp = jnp.pad(wk, ((0, hp - h), (0, hp - h)))                      # zero-padded
    wqp = jnp.pad(wq, ((0, hp - h), (0, hp - h)))
    wkqp = jnp.concatenate([wkp, wqp], axis=1).astype(jnp.bfloat16)    # (HP, 2*HP)
    bkqp = jnp.concatenate([pad_cols(bk, hp), pad_cols(bq, hp)],
                           axis=1).astype(jnp.float32)                 # (1, 2*HP)
    return wte.astype(jnp.float32), w1p, b1p, wkqp, bkqp


def net_forward(x_tokens, prepared):
    """x_tokens: (B, N, S) int32; returns (B, N-1) f32 log-probs."""
    wte, w1p, b1p, wkqp, bkqp = prepared
    B, N, S = x_tokens.shape
    NC = N - 1
    V, E = wte.shape
    HP = w1p.shape[1]
    NCP = 128                                       # lane-dense class dim
    M_PAD = max(16, ((B * N + 15) // 16) * 16)      # bf16 sublane pack for matmul LHS rows

    # TODO(synk): the full pretrained GPT2Model (GPTEmbed -> last_hidden_state[:, :, -1])
    # has no clean self-contained Pallas equivalent; a last-token embedding lookup
    # (fused into the kernel via scalar prefetch) stands in for the GPT embedding.
    ids = x_tokens[:, :, -1].reshape(B * N).astype(jnp.int32)

    out = pl.pallas_call(
        net_kernel,
        out_shape=jax.ShapeDtypeStruct((B, NCP), jnp.float32),
        grid_spec=pltpu.PrefetchScalarGridSpec(
            num_scalar_prefetch=1,                  # ids -> SMEM, read as scalars in-kernel
            grid=(1,),                              # single step: no per-step pipeline tax
            in_specs=[
                # wte stays VMEM-resident (tiny here); for real GPT2 vocab switch to a
                # pl.Element row-gather BlockSpec driven by the prefetched ids instead.
                pl.BlockSpec((V, E), lambda i, ids: (0, 0)),
                pl.BlockSpec((E, HP), lambda i, ids: (0, 0)),
                pl.BlockSpec((1, HP), lambda i, ids: (0, 0)),
                pl.BlockSpec((HP, 2 * HP), lambda i, ids: (0, 0)),
                pl.BlockSpec((1, 2 * HP), lambda i, ids: (0, 0)),
            ],
            out_specs=pl.BlockSpec((B, NCP), lambda i, ids: (0, 0)),
            scratch_shapes=[pltpu.VMEM((M_PAD, E), jnp.float32)],
        ),
    )(ids, wte, w1p, b1p, wkqp, bkqp)
    return out[:, :NC]                              # drop the padded logit lanes


def init_params(key, vocab, n_embd, hidden):
    ks = jax.random.split(key, 7)

    def unif(k, shape, fan_in):
        bound = 1.0 / jnp.sqrt(float(fan_in))
        return jax.random.uniform(k, shape, jnp.float32, -bound, bound)

    wte = jax.random.normal(ks[0], (vocab, n_embd), jnp.float32) * 0.02
    w1 = unif(ks[1], (n_embd, hidden), n_embd)      # Linear(n_embd -> hidden), stored (in, out)
    b1 = unif(ks[2], (1, hidden), n_embd)
    wk = unif(ks[3], (hidden, hidden), hidden)      # K
    bk = unif(ks[4], (1, hidden), hidden)
    wq = unif(ks[5], (hidden, hidden), hidden)      # Q
    bq = unif(ks[6], (1, hidden), hidden)
    return (wte, w1, b1, wk, bk, wq, bq)


if __name__ == "__main__":
    B = 2              # batch
    N_CLASSES = 4      # number of antonym choices
    N = N_CLASSES + 1  # lemma + choices
    S = 8              # token sequence length per word
    VOCAB = 128        # small stand-in vocab
    N_EMBD = 64        # small stand-in for GPT2 n_embd
    HIDDEN = 32        # hidden_size

    key = jax.random.PRNGKey(0)
    k_param, k_x = jax.random.split(key)
    params = init_params(k_param, VOCAB, N_EMBD, HIDDEN)
    prepared = prepare_params(params)               # pad/fuse/cast once, outside the kernel
    x = jax.random.randint(k_x, (B, N, S), 0, VOCAB, dtype=jnp.int32)

    out = jax.jit(net_forward)(x, prepared)
    out = jax.block_until_ready(out)

    assert out.shape == (B, N_CLASSES), out.shape
    # log_softmax rows must (approximately) exponentiate-sum to 1
    assert jnp.allclose(jnp.sum(jnp.exp(out), axis=1), 1.0, atol=1e-5)
    print("KERNEL_OK")
</pallas_src>

<mosaic_0001>
module attributes {stable_mosaic.version = 11 : i64} {
  func.func @net_kernel(%arg0: i32, %arg1: memref<10xi32, #tpu.memory_space<smem>>, %arg2: memref<128x64xf32, #tpu.memory_space<vmem>>, %arg3: memref<64x128xbf16, #tpu.memory_space<vmem>>, %arg4: memref<1x128xf32, #tpu.memory_space<vmem>>, %arg5: memref<128x256xbf16, #tpu.memory_space<vmem>>, %arg6: memref<1x256xf32, #tpu.memory_space<vmem>>, %arg7: memref<2x128xf32, #tpu.memory_space<vmem>>, %arg8: memref<16x64xf32, #tpu.memory_space<vmem>>) attributes {dimension_semantics = [#tpu.dimension_semantics<arbitrary>], iteration_bounds = array<i64: 1>, scalar_prefetch = 1 : i64, scratch_operands = 1 : i64, tpu.core_type = #tpu.core_type<tc>, window_params = [{pipeline_mode = #tpu.pipeline_mode<synchronous>, transform_indices = @transform_0, window_bounds = array<i64: 128, 64>}, {pipeline_mode = #tpu.pipeline_mode<synchronous>, transform_indices = @transform_1, window_bounds = array<i64: 64, 128>}, {pipeline_mode = #tpu.pipeline_mode<synchronous>, transform_indices = @transform_2, window_bounds = array<i64: 1, 128>}, {pipeline_mode = #tpu.pipeline_mode<synchronous>, transform_indices = @transform_3, window_bounds = array<i64: 128, 256>}, {pipeline_mode = #tpu.pipeline_mode<synchronous>, transform_indices = @transform_4, window_bounds = array<i64: 1, 256>}, {pipeline_mode = #tpu.pipeline_mode<synchronous>, transform_indices = @transform_5, window_bounds = array<i64: 2, 128>}]} {
    %cst = arith.constant 0.000000e+00 : f32
    %0 = vector.broadcast %cst : f32 to vector<16x64xf32>
    %c0 = arith.constant 0 : index
    %c0_0 = arith.constant 0 : index
    %1 = vector.load %arg8[%c0, %c0_0] : memref<16x64xf32, #tpu.memory_space<vmem>>, vector<16x64xf32>
    tpu.vector_store %arg8[%c0, %c0_0], %0 {strides = array<i32>} : memref<16x64xf32, #tpu.memory_space<vmem>>, vector<16x64xf32>,
    %c0_1 = arith.constant 0 : index
    %2 = memref.load %arg1[%c0_1] : memref<10xi32, #tpu.memory_space<smem>>
    %3 = arith.index_cast %2 : i32 to index
    %c0_2 = arith.constant 0 : index
    %4 = vector.load %arg2[%3, %c0_2] : memref<128x64xf32, #tpu.memory_space<vmem>>, vector<1x64xf32>
    %c0_3 = arith.constant 0 : index
    %c0_4 = arith.constant 0 : index
    %5 = vector.load %arg8[%c0_3, %c0_4] : memref<16x64xf32, #tpu.memory_space<vmem>>, vector<1x64xf32>
    tpu.vector_store %arg8[%c0_3, %c0_4], %4 {strides = array<i32>} : memref<16x64xf32, #tpu.memory_space<vmem>>, vector<1x64xf32>,
    %c1 = arith.constant 1 : index
    %6 = memref.load %arg1[%c1] : memref<10xi32, #tpu.memory_space<smem>>
    %7 = arith.index_cast %6 : i32 to index
    %c0_5 = arith.constant 0 : index
    %8 = vector.load %arg2[%7, %c0_5] : memref<128x64xf32, #tpu.memory_space<vmem>>, vector<1x64xf32>
    %c1_6 = arith.constant 1 : index
    %c0_7 = arith.constant 0 : index
    %9 = vector.load %arg8[%c1_6, %c0_7] : memref<16x64xf32, #tpu.memory_space<vmem>>, vector<1x64xf32>
    tpu.vector_store %arg8[%c1_6, %c0_7], %8 {strides = array<i32>} : memref<16x64xf32, #tpu.memory_space<vmem>>, vector<1x64xf32>,
    %c2 = arith.constant 2 : index
    %10 = memref.load %arg1[%c2] : memref<10xi32, #tpu.memory_space<smem>>
    %11 = arith.index_cast %10 : i32 to index
    %c0_8 = arith.constant 0 : index
    %12 = vector.load %arg2[%11, %c0_8] : memref<128x64xf32, #tpu.memory_space<vmem>>, vector<1x64xf32>
    %c2_9 = arith.constant 2 : index
    %c0_10 = arith.constant 0 : index
    %13 = vector.load %arg8[%c2_9, %c0_10] : memref<16x64xf32, #tpu.memory_space<vmem>>, vector<1x64xf32>
    tpu.vector_store %arg8[%c2_9, %c0_10], %12 {strides = array<i32>} : memref<16x64xf32, #tpu.memory_space<vmem>>, vector<1x64xf32>,
    %c3 = arith.constant 3 : index
    %14 = memref.load %arg1[%c3] : memref<10xi32, #tpu.memory_space<smem>>
    %15 = arith.index_cast %14 : i32 to index
    %c0_11 = arith.constant 0 : index
    %16 = vector.load %arg2[%15, %c0_11] : memref<128x64xf32, #tpu.memory_space<vmem>>, vector<1x64xf32>
    %c3_12 = arith.constant 3 : index
    %c0_13 = arith.constant 0 : index
    %17 = vector.load %arg8[%c3_12, %c0_13] : memref<16x64xf32, #tpu.memory_space<vmem>>, vector<1x64xf32>
    tpu.vector_store %arg8[%c3_12, %c0_13], %16 {strides = array<i32>} : memref<16x64xf32, #tpu.memory_space<vmem>>, vector<1x64xf32>,
    %c4 = arith.constant 4 : index
    %18 = memref.load %arg1[%c4] : memref<10xi32, #tpu.memory_space<smem>>
    %19 = arith.index_cast %18 : i32 to index
    %c0_14 = arith.constant 0 : index
    %20 = vector.load %arg2[%19, %c0_14] : memref<128x64xf32, #tpu.memory_space<vmem>>, vector<1x64xf32>
    %c4_15 = arith.constant 4 : index
    %c0_16 = arith.constant 0 : index
    %21 = vector.load %arg8[%c4_15, %c0_16] : memref<16x64xf32, #tpu.memory_space<vmem>>, vector<1x64xf32>
    tpu.vector_store %arg8[%c4_15, %c0_16], %20 {strides = array<i32>} : memref<16x64xf32, #tpu.memory_space<vmem>>, vector<1x64xf32>,
    %c5 = arith.constant 5 : index
    %22 = memref.load %arg1[%c5] : memref<10xi32, #tpu.memory_space<smem>>
    %23 = arith.index_cast %22 : i32 to index
    %c0_17 = arith.constant 0 : index
    %24 = vector.load %arg2[%23, %c0_17] : memref<128x64xf32, #tpu.memory_space<vmem>>, vector<1x64xf32>
    %c5_18 = arith.constant 5 : index
    %c0_19 = arith.constant 0 : index
    %25 = vector.load %arg8[%c5_18, %c0_19] : memref<16x64xf32, #tpu.memory_space<vmem>>, vector<1x64xf32>
    tpu.vector_store %arg8[%c5_18, %c0_19], %24 {strides = array<i32>} : memref<16x64xf32, #tpu.memory_space<vmem>>, vector<1x64xf32>,
    %c6 = arith.constant 6 : index
    %26 = memref.load %arg1[%c6] : memref<10xi32, #tpu.memory_space<smem>>
    %27 = arith.index_cast %26 : i32 to index
    %c0_20 = arith.constant 0 : index
    %28 = vector.load %arg2[%27, %c0_20] : memref<128x64xf32, #tpu.memory_space<vmem>>, vector<1x64xf32>
    %c6_21 = arith.constant 6 : index
    %c0_22 = arith.constant 0 : index
    %29 = vector.load %arg8[%c6_21, %c0_22] : memref<16x64xf32, #tpu.memory_space<vmem>>, vector<1x64xf32>
    tpu.vector_store %arg8[%c6_21, %c0_22], %28 {strides = array<i32>} : memref<16x64xf32, #tpu.memory_space<vmem>>, vector<1x64xf32>,
    %c7 = arith.constant 7 : index
    %30 = memref.load %arg1[%c7] : memref<10xi32, #tpu.memory_space<smem>>
    %31 = arith.index_cast %30 : i32 to index
    %c0_23 = arith.constant 0 : index
    %32 = vector.load %arg2[%31, %c0_23] : memref<128x64xf32, #tpu.memory_space<vmem>>, vector<1x64xf32>
    %c7_24 = arith.constant 7 : index
    %c0_25 = arith.constant 0 : index
    %33 = vector.load %arg8[%c7_24, %c0_25] : memref<16x64xf32, #tpu.memory_space<vmem>>, vector<1x64xf32>
    tpu.vector_store %arg8[%c7_24, %c0_25], %32 {strides = array<i32>} : memref<16x64xf32, #tpu.memory_space<vmem>>, vector<1x64xf32>,
    %c8 = arith.constant 8 : index
    %34 = memref.load %arg1[%c8] : memref<10xi32, #tpu.memory_space<smem>>
    %35 = arith.index_cast %34 : i32 to index
    %c0_26 = arith.constant 0 : index
    %36 = vector.load %arg2[%35, %c0_26] : memref<128x64xf32, #tpu.memory_space<vmem>>, vector<1x64xf32>
    %c8_27 = arith.constant 8 : index
    %c0_28 = arith.constant 0 : index
    %37 = vector.load %arg8[%c8_27, %c0_28] : memref<16x64xf32, #tpu.memory_space<vmem>>, vector<1x64xf32>
    tpu.vector_store %arg8[%c8_27, %c0_28], %36 {strides = array<i32>} : memref<16x64xf32, #tpu.memory_space<vmem>>, vector<1x64xf32>,
    %c9 = arith.constant 9 : index
    %38 = memref.load %arg1[%c9] : memref<10xi32, #tpu.memory_space<smem>>
    %39 = arith.index_cast %38 : i32 to index
    %c0_29 = arith.constant 0 : index
    %40 = vector.load %arg2[%39, %c0_29] : memref<128x64xf32, #tpu.memory_space<vmem>>, vector<1x64xf32>
    %c9_30 = arith.constant 9 : index
    %c0_31 = arith.constant 0 : index
    %41 = vector.load %arg8[%c9_30, %c0_31] : memref<16x64xf32, #tpu.memory_space<vmem>>, vector<1x64xf32>
    tpu.vector_store %arg8[%c9_30, %c0_31], %40 {strides = array<i32>} : memref<16x64xf32, #tpu.memory_space<vmem>>, vector<1x64xf32>,
    %c0_32 = arith.constant 0 : index
    %c0_33 = arith.constant 0 : index
    %42 = vector.load %arg8[%c0_32, %c0_33] : memref<16x64xf32, #tpu.memory_space<vmem>>, vector<16x64xf32>
    %43 = arith.truncf %42 : vector<16x64xf32> to vector<16x64xbf16>
    %c0_34 = arith.constant 0 : index
    %c0_35 = arith.constant 0 : index
    %44 = vector.load %arg3[%c0_34, %c0_35] : memref<64x128xbf16, #tpu.memory_space<vmem>>, vector<64x128xbf16>
    %cst_36 = arith.constant dense<0.000000e+00> : vector<16x128xf32>
    %45 = tpu.matmul %43, %44, %cst_36 {dimension_numbers = #tpu.dot_dimension_numbers<[1], [0], [0], [1], [0, 0, 1, 1], [], []>} : vector<16x64xbf16>, vector<64x128xbf16>, vector<16x128xf32> -> vector<16x128xf32>
    %c0_37 = arith.constant 0 : index
    %c0_38 = arith.constant 0 : index
    %46 = vector.load %arg4[%c0_37, %c0_38] : memref<1x128xf32, #tpu.memory_space<vmem>>, vector<1x128xf32>
    %47 = vector.broadcast %46 : vector<1x128xf32> to vector<16x128xf32>
    %48 = arith.addf %45, %47 : vector<16x128xf32>
    %cst_39 = arith.constant 0.000000e+00 : f32
    %49 = vector.broadcast %cst_39 : f32 to vector<16x128xf32>
    %50 = arith.maximumf %48, %49 : vector<16x128xf32>
    %51 = arith.truncf %50 : vector<16x128xf32> to vector<16x128xbf16>
    %c0_40 = arith.constant 0 : index
    %c0_41 = arith.constant 0 : index
    %52 = vector.load %arg5[%c0_40, %c0_41] : memref<128x256xbf16, #tpu.memory_space<vmem>>, vector<128x256xbf16>
    %cst_42 = arith.constant dense<0.000000e+00> : vector<16x256xf32>
    %53 = tpu.matmul %51, %52, %cst_42 {dimension_numbers = #tpu.dot_dimension_numbers<[1], [0], [0], [1], [0, 0, 1, 1], [], []>} : vector<16x128xbf16>, vector<128x256xbf16>, vector<16x256xf32> -> vector<16x256xf32>
    %c0_43 = arith.constant 0 : index
    %c0_44 = arith.constant 0 : index
    %54 = vector.load %arg6[%c0_43, %c0_44] : memref<1x256xf32, #tpu.memory_space<vmem>>, vector<1x256xf32>
    %55 = vector.broadcast %54 : vector<1x256xf32> to vector<16x256xf32>
    %56 = arith.addf %53, %55 : vector<16x256xf32>
    %cst_45 = arith.constant 0.000000e+00 : f32
    %57 = vector.broadcast %cst_45 : f32 to vector<2x128xf32>
    %c0_46 = arith.constant 0 : index
    %c0_47 = arith.constant 0 : index
    %58 = vector.load %arg7[%c0_46, %c0_47] : memref<2x128xf32, #tpu.memory_space<vmem>>, vector<2x128xf32>
    tpu.vector_store %arg7[%c0_46, %c0_47], %57 {strides = array<i32>} : memref<2x128xf32, #tpu.memory_space<vmem>>, vector<2x128xf32>,
    %59 = vector.extract_strided_slice %56 {offsets = [0, 0], sizes = [1, 128], strides = [1, 1]} : vector<16x256xf32> to vector<1x128xf32>
    %60 = vector.extract_strided_slice %56 {offsets = [1, 128], sizes = [4, 128], strides = [1, 1]} : vector<16x256xf32> to vector<4x128xf32>
    %cst_48 = arith.constant dense<0.000000e+00> : vector<1x4xf32>
    %61 = tpu.matmul %59, %60, %cst_48 {dimension_numbers = #tpu.dot_dimension_numbers<[1], [1], [0], [0], [0, 0, 1, 0], [], []>} : vector<1x128xf32>, vector<4x128xf32>, vector<1x4xf32> -> vector<1x4xf32>
    %cst_49 = arith.constant dense<0xFF800000> : vector<1xf32>
    %62 = vector.multi_reduction <maximumf>, %61, %cst_49 [1] : vector<1x4xf32> to vector<1xf32>
    %63 = vector.shape_cast %62 : vector<1xf32> to vector<1x1xf32>
    %64 = vector.broadcast %63 : vector<1x1xf32> to vector<1x4xf32>
    %65 = arith.subf %61, %64 : vector<1x4xf32>
    %66 = math.exp %65 : vector<1x4xf32>
    %cst_50 = arith.constant dense<0.000000e+00> : vector<1xf32>
    %67 = vector.multi_reduction <add>, %66, %cst_50 [1] : vector<1x4xf32> to vector<1xf32>
    %68 = vector.shape_cast %67 : vector<1xf32> to vector<1x1xf32>
    %69 = math.log %68 : vector<1x1xf32>
    %70 = vector.broadcast %69 : vector<1x1xf32> to vector<1x4xf32>
    %71 = arith.subf %65, %70 : vector<1x4xf32>
    %c0_51 = arith.constant 0 : index
    %c0_52 = arith.constant 0 : index
    %72 = vector.load %arg7[%c0_51, %c0_52] : memref<2x128xf32, #tpu.memory_space<vmem>>, vector<1x4xf32>
    tpu.vector_store %arg7[%c0_51, %c0_52], %71 {strides = array<i32>} : memref<2x128xf32, #tpu.memory_space<vmem>>, vector<1x4xf32>,
    %73 = vector.extract_strided_slice %56 {offsets = [5, 0], sizes = [1, 128], strides = [1, 1]} : vector<16x256xf32> to vector<1x128xf32>
    %74 = vector.extract_strided_slice %56 {offsets = [6, 128], sizes = [4, 128], strides = [1, 1]} : vector<16x256xf32> to vector<4x128xf32>
    %cst_53 = arith.constant dense<0.000000e+00> : vector<1x4xf32>
    %75 = tpu.matmul %73, %74, %cst_53 {dimension_numbers = #tpu.dot_dimension_numbers<[1], [1], [0], [0], [0, 0, 1, 0], [], []>} : vector<1x128xf32>, vector<4x128xf32>, vector<1x4xf32> -> vector<1x4xf32>
    %cst_54 = arith.constant dense<0xFF800000> : vector<1xf32>
    %76 = vector.multi_reduction <maximumf>, %75, %cst_54 [1] : vector<1x4xf32> to vector<1xf32>
    %77 = vector.shape_cast %76 : vector<1xf32> to vector<1x1xf32>
    %78 = vector.broadcast %77 : vector<1x1xf32> to vector<1x4xf32>
    %79 = arith.subf %75, %78 : vector<1x4xf32>
    %80 = math.exp %79 : vector<1x4xf32>
    %cst_55 = arith.constant dense<0.000000e+00> : vector<1xf32>
    %81 = vector.multi_reduction <add>, %80, %cst_55 [1] : vector<1x4xf32> to vector<1xf32>
    %82 = vector.shape_cast %81 : vector<1xf32> to vector<1x1xf32>
    %83 = math.log %82 : vector<1x1xf32>
    %84 = vector.broadcast %83 : vector<1x1xf32> to vector<1x4xf32>
    %85 = arith.subf %79, %84 : vector<1x4xf32>
    %c1_56 = arith.constant 1 : index
    %c0_57 = arith.constant 0 : index
    %86 = vector.load %arg7[%c1_56, %c0_57] : memref<2x128xf32, #tpu.memory_space<vmem>>, vector<1x4xf32>
    tpu.vector_store %arg7[%c1_56, %c0_57], %85 {strides = array<i32>} : memref<2x128xf32, #tpu.memory_space<vmem>>, vector<1x4xf32>,
    return
  }
  func.func @transform_0(%arg0: i32, %arg1: memref<10xi32, #tpu.memory_space<smem>>) -> (i32, i32) {
    %c0_i32 = arith.constant 0 : i32
    %c0_i32_0 = arith.constant 0 : i32
    %c0_i32_1 = arith.constant 0 : i32
    return %c0_i32, %c0_i32_0 : i32, i32
  }
  func.func @transform_1(%arg0: i32, %arg1: memref<10xi32, #tpu.memory_space<smem>>) -> (i32, i32) {
    %c0_i32 = arith.constant 0 : i32
    %c0_i32_0 = arith.constant 0 : i32
    %c0_i32_1 = arith.constant 0 : i32
    return %c0_i32, %c0_i32_0 : i32, i32
  }
  func.func @transform_2(%arg0: i32, %arg1: memref<10xi32, #tpu.memory_space<smem>>) -> (i32, i32) {
    %c0_i32 = arith.constant 0 : i32
    %c0_i32_0 = arith.constant 0 : i32
    %c0_i32_1 = arith.constant 0 : i32
    return %c0_i32, %c0_i32_0 : i32, i32
  }
  func.func @transform_3(%arg0: i32, %arg1: memref<10xi32, #tpu.memory_space<smem>>) -> (i32, i32) {
    %c0_i32 = arith.constant 0 : i32
    %c0_i32_0 = arith.constant 0 : i32
    %c0_i32_1 = arith.constant 0 : i32
    return %c0_i32, %c0_i32_0 : i32, i32
  }
  func.func @transform_4(%arg0: i32, %arg1: memref<10xi32, #tpu.memory_space<smem>>) -> (i32, i32) {
    %c0_i32 = arith.constant 0 : i32
    %c0_i32_0 = arith.constant 0 : i32
    %c0_i32_1 = arith.constant 0 : i32
    return %c0_i32, %c0_i32_0 : i32, i32
  }
  func.func @transform_5(%arg0: i32, %arg1: memref<10xi32, #tpu.memory_space<smem>>) -> (i32, i32) {
    %c0_i32 = arith.constant 0 : i32
    %c0_i32_0 = arith.constant 0 : i32
    %c0_i32_1 = arith.constant 0 : i32
    return %c0_i32, %c0_i32_0 : i32, i32
  }
}

</mosaic_0001>

<bundles_post_ra>
// kernel: squeeze.1
= control target key start
LH: loop header
LB: loop body
LE: loop exit
PB: predicated region body
PF: predicated region fallthrough
CT: control target
= control target key end

     0   :  { %vm7_vm0 = vcmask 39936   ;;  %vm13_vm1 = vcmask 80936   ;;  %s39_s0 = inlined_call_operand.vmem [shape: s32[2,5,1], index: 0, kind: input, shape index: {}]   ;;  %s40_s1 = inlined_call_operand.vmem [shape: s32[10], index: 1, kind: output, shape index: {}]  }
   0x1   :  { %v4_v0 = vld [vmem:[%s39_s0] sm:$0x3]  ;;  %s22_s0 = smov 5  }
   0x2   :  { %5 = vst [vmem:[#allocation1] sm:$0x3] %v4_v0 }
   0x9   :  { %v10_v1 = vld [vmem:[#allocation1 + $0x1] sm:$0x1]   ;;  %v6_v2 = vld [vmem:[#allocation1] sm:$0x1]  }
   0xa   :  { %11 = vrot.lane.b32.xlu0 %v10_v1, %s22_s0  ;;  %8 = vst.msk [vmem:[#allocation0] sm:$0x1] %vm7_vm0, %v6_v2  }
  0x7c   :  { %v12_v3 = vpop.permute.xlu0 %11  }
  0x7d   :  { %14 = vst.msk [vmem:[#allocation0] sm:$0x1] %vm13_vm1, %v12_v3  }
  0x84   :  { %v18_v4 = vld [vmem:[#allocation0] sm:$0x1] }
  0x85   :  { %20 = vst [vmem:[%s40_s1] sm:$0x1] %v18_v4 }

// kernel: net_forward.1
= control target key start
LH: loop header
LB: loop body
LE: loop exit
PB: predicated region body
PF: predicated region fallthrough
CT: control target
= control target key end

     0   :  { %s866_s0 = inlined_call_operand.vmem [shape: s32[10], index: 0, kind: input, shape index: {}]   ;;  %s867_s1 = inlined_call_operand.vmem [shape: f32[128,64], index: 1, kind: input, shape index: {}]   ;;  %s868_s2 = inlined_call_operand.vmem [shape: bf16[64,128], index: 2, kind: input, shape index: {}]   ;;  %s869_s3 = inlined_call_operand.vmem [shape: f32[1,128], index: 3, kind: input, shape index: {}]   ;;  %s870_s4 = inlined_call_operand.vmem [shape: bf16[128,256], index: 4, kind: input, shape index: {}]   ;;  %s871_s5 = inlined_call_operand.vmem [shape: f32[1,256], index: 5, kind: input, shape index: {}]   ;;  %s872_s6 = inlined_call_operand.hbm [shape: f32[2,128], index: 6, kind: output, shape index: {}]  }
   0x1   :  { %s11_s23 = sshll.u32 %s866_s0, 4  ;;  %s12_s23 = int_to_ptr.vmem [resolvable:$true] %s11_s23 }
   0x2   :  { %s619_s24 = scalar_lea.vmem %s12_s23, 16  ;;  %p624_p1 = scmp.lt.s32.totalorder %s12_s23, %s12_s23 }
   0x3   :  { %p620_p0 = scmp.ne.s32.totalorder %s12_s23, %s619_s24  ;;  %p625_p2 = scmp.lt.s32.totalorder %s619_s24, %s619_s24 }
   0x5   :  { %p626_p3 = por %p625_p2, %p624_p1 }
   0x7   :  { %p627_p4 = pnand %p626_p3, %p620_p0 }
   0x9   :  { %630 = shalt.err (!%p627_p4)  }
   0xa   :  { %s657_s25 = smov [#allocation4]  }
   0xb   :  { %14 = dma.vmem_to_smem %s12_s23, 16, %s657_s25, [#allocation3] }
   0xc   :  { %653 = dma.done.wait [#allocation3], 16 }
   0xd   :  { %654 = vsyncadd [#allocation3], 4294967280 }
   0xe   :  { %16 = sfence }
   0xf   :  { %v583_v0 = vld [vmem:[%s868_s2] sm:$0xff]   ;;  %v658_v1 = vmov 0.0   ;;  %v584_v2 = vld [vmem:[%s868_s2 + $0x8] sm:$0xff]   ;;  %vm659_vm0 = vmmov 0   ;;  %vm29_vm1 = vcmask 523264   ;;  %v585_v3 = vld [vmem:[%s868_s2 + $0x10] sm:$0xff]  }
  0x10   :  { %556 = vmatprep.subr.bf16.mxu0 %v658_v1  ;;  %312 = vst [vmem:[#allocation5] sm:$0x3] %v658_v1  ;;  %564 = vmatprep.mubr.msk.bf16.mxu0 %vm659_vm0, %v658_v1  ;;  %30 = vst.msk [vmem:[#allocation2] sm:$0xff] %vm29_vm1, %v658_v1  ;;  %s32_s7 = sld [smem:[#allocation4]]  ;;  %s516_s8 = sld [smem:[#allocation4 + $0x1]]  ;;  %vm35_vm2 = vcmask 516096  }
  0x11   :  { %557 = vmatpush3.bf16.msra.mxu0 %v583_v0  ;;  %31 = vst.msk [vmem:[#allocation2 + $0x8] sm:$0xff] %vm29_vm1, %v658_v1  ;;  %s718_s9 = sld [smem:[#allocation4 + $0x2]]  ;;  %s720_s10 = sld [smem:[#allocation4 + $0x3]]  ;;  %v587_v4 = vld [vmem:[%s870_s4 + $0x4] ss:$8 sps:$4 sm:$0xff]   ;;  %v586_v8 = vld [vmem:[%s868_s2 + $0x18] sm:$0xff]  }
  0x12   :  { %558 = vmatprep.subr.bf16.mxu0 %v658_v1  ;;  %s725_s13 = sld [smem:[#allocation4 + $0x4]]  ;;  %s727_s14 = sld [smem:[#allocation4 + $0x5]]  ;;  %v589_v5 = vld [vmem:[%s870_s4] ss:$8 sps:$4 sm:$0xff]   ;;  %270 = vmatprep.subr.bf16.mxu1 %v587_v4  ;;  %v590_v6 = vld [vmem:[%s870_s4 + $0x14] ss:$8 sps:$4 sm:$0xff]  }
  0x13   :  { %s733_s17 = sld [smem:[#allocation4 + $0x6]]  ;;  %s735_s18 = sld [smem:[#allocation4 + $0x7]]  ;;  %271 = vmatpush1.bf16.msra.mxu1 %v589_v5  ;;  %v592_v7 = vld [vmem:[%s870_s4 + $0x10] ss:$8 sps:$4 sm:$0xff]   ;;  %v593_v9 = vld [vmem:[%s870_s4 + $0x24] ss:$8 sps:$4 sm:$0xff]  }
  0x14   :  { %s737_s19 = sld [smem:[#allocation4 + $0x8]]  ;;  %s739_s20 = sld [smem:[#allocation4 + $0x9]]  ;;  %272 = vmatprep.subr.bf16.mxu1 %v590_v6  ;;  %v595_v14 = vld [vmem:[%s870_s4 + $0x20] ss:$8 sps:$4 sm:$0xff]   ;;  %v596_v17 = vld [vmem:[%s870_s4 + $0x34] ss:$8 sps:$4 sm:$0xff]  }
  0x15   :  { %559 = vmatpush3.bf16.msra.mxu0 %v584_v2  ;;  %v598_v22 = vld [vmem:[%s870_s4 + $0x30] ss:$8 sps:$4 sm:$0xff]   ;;  %v599_v23 = vld [vmem:[%s870_s4 + $0x44] ss:$8 sps:$4 sm:$0xff]  }
  0x16   :  { %560 = vmatprep.subr.bf16.mxu0 %v658_v1  ;;  %s33_s28 = scalar_lea.vmem %s867_s1, %s32_s7  ;;  %s38_s11 = scalar_lea.vmem %s867_s1, %s516_s8 }
  0x17   :  { %v34_v10 = vld [vmem:[%s33_s28] sm:$0x1]  ;;  %s42_s21 = scalar_lea.vmem %s867_s1, %s718_s9  ;;  %s46_s23 = scalar_lea.vmem %s867_s1, %s720_s10  ;;  %273 = vmatpush1.bf16.msra.mxu1 %v592_v7 }
  0x18   :  { %v39_v11 = vld [vmem:[%s38_s11] sm:$0x1]  ;;  %36 = vst.msk [vmem:[#allocation2] sm:$0x1] %vm35_vm2, %v34_v10  ;;  %s50_s25 = scalar_lea.vmem %s867_s1, %s725_s13  ;;  %s54_s0 = scalar_lea.vmem %s867_s1, %s727_s14  ;;  %274 = vmatprep.subr.bf16.mxu1 %v593_v9 }
  0x19   :  { %561 = vmatpush3.bf16.msra.mxu0 %v585_v3  ;;  %40 = vst.msk [vmem:[#allocation2 + $0x1] sm:$0x1] %vm35_vm2, %v39_v11  ;;  %v43_v12 = vld [vmem:[%s42_s21] sm:$0x1]  ;;  %s58_s13 = scalar_lea.vmem %s867_s1, %s733_s17  ;;  %s62_s14 = scalar_lea.vmem %s867_s1, %s735_s18 }
  0x1a   :  { %562 = vmatprep.subr.bf16.mxu0 %v658_v1  ;;  %v47_v13 = vld [vmem:[%s46_s23] sm:$0x1]  ;;  %44 = vst.msk [vmem:[#allocation2 + $0x2] sm:$0x1] %vm35_vm2, %v43_v12  ;;  %s66_s17 = scalar_lea.vmem %s867_s1, %s737_s19  ;;  %s70_s18 = scalar_lea.vmem %s867_s1, %s739_s20 }
  0x1b   :  { %48 = vst.msk [vmem:[#allocation2 + $0x3] sm:$0x1] %vm35_vm2, %v47_v13  ;;  %v51_v15 = vld [vmem:[%s50_s25] sm:$0x1]  ;;  %275 = vmatpush1.bf16.msra.mxu1 %v595_v14 }
  0x1c   :  { %v55_v16 = vld [vmem:[%s54_s0] sm:$0x1]  ;;  %52 = vst.msk [vmem:[#allocation2 + $0x4] sm:$0x1] %vm35_vm2, %v51_v15  ;;  %276 = vmatprep.subr.bf16.mxu1 %v596_v17 }
  0x1d   :  { %563 = vmatpush3.bf16.msra.mxu0 %v586_v8  ;;  %56 = vst.msk [vmem:[#allocation2 + $0x5] sm:$0x1] %vm35_vm2, %v55_v16  ;;  %v59_v18 = vld [vmem:[%s58_s13] sm:$0x1] }
  0x1e   :  { %v63_v19 = vld [vmem:[%s62_s14] sm:$0x1]  ;;  %60 = vst.msk [vmem:[#allocation2 + $0x6] sm:$0x1] %vm35_vm2, %v59_v18  ;;  %568 = vmatprep.subr.mxu0 %v658_v1 }
  0x1f   :  { %64 = vst.msk [vmem:[#allocation2 + $0x7] sm:$0x1] %vm35_vm2, %v63_v19  ;;  %v67_v20 = vld [vmem:[%s66_s17] sm:$0x1] }
  0x20   :  { %v71_v21 = vld [vmem:[%s70_s18] sm:$0x1]  ;;  %68 = vst.msk [vmem:[#allocation2 + $0x8] sm:$0x1] %vm35_vm2, %v67_v20 }
  0x21   :  { %72 = vst.msk [vmem:[#allocation2 + $0x9] sm:$0x1] %vm35_vm2, %v71_v21 }
  0x22   :  { %17 = vsyncpa [#allocation6], 0  ;;  %277 = vmatpush1.bf16.msra.mxu1 %v598_v22  ;;  %v601_v24 = vld [vmem:[%s870_s4 + $0x40] ss:$8 sps:$4 sm:$0xff]   ;;  %v602_v25 = vld [vmem:[%s870_s4 + $0x54] ss:$8 sps:$4 sm:$0xff]   ;;  %v180_v45 = vlaneseq }
  0x23   :  { %278 = vmatprep.subr.bf16.mxu1 %v599_v23  ;;  %v604_v29 = vld [vmem:[%s870_s4 + $0x50] ss:$8 sps:$4 sm:$0xff]   ;;  %v605_v30 = vld [vmem:[%s870_s4 + $0x64] ss:$8 sps:$4 sm:$0xff]   ;;  %v607_v31 = vld [vmem:[%s870_s4 + $0x60] ss:$8 sps:$4 sm:$0xff]  }
  0x24   :  { %v608_v32 = vld [vmem:[%s870_s4 + $0x74] ss:$8 sps:$4 sm:$0xff]   ;;  %v610_v33 = vld [vmem:[%s870_s4 + $0x70] ss:$8 sps:$4 sm:$0xff]   ;;  %v660_v34 = vmov 0   ;;  %v181_v46 = vshrl.u32 %v180_v45, 7 }
  0x25   :  { %302 = vmatprep.mubr.bf16.mxu1 %v660_v34  ;;  %v525_v35 = vld [vmem:[%s869_s3] ss:$0 sm:$0xff]  ;;  %vm404_vm3 = vcmask 1041408   ;;  %vm386_vm4 = vcmask 24576   ;;  %s661_s3 = smov [#allocation5]  }
  0x26   :  { %v73_v26 = vld [vmem:[#allocation2] sm:$0xff]  ;;  %279 = vmatpush1.bf16.msra.mxu1 %v601_v24  ;;  %v186_v47 = vsub.s32 1, %v181_v46  ;;  %v182_v50 = vsub.s32 0, %v181_v46 }
  0x27   :  { %280 = vmatprep.subr.bf16.mxu1 %v602_v25  ;;  %v178_v48 = vld [vmem:[%s871_s5] sm:$0x3]  ;;  %s498_s5 = sshll.u32 %s661_s3, 4  ;;  %s499_s5 = int_to_ptr.vmem [resolvable:$true] %s498_s5 }
  0x28   :  { %v74_v27 = vld [vmem:[#allocation2 + $0x8] sm:$0xff]  ;;  %v187_v49 = vrot.slane %v178_v48, %v186_v47  ;;  %v183_v55 = vrot.slane %v178_v48, %v182_v50  ;;  %s631_s16 = scalar_lea.vmem %s499_s5, 32  ;;  %p636_p6 = scmp.lt.s32.totalorder %s499_s5, %s499_s5 }
  0x29   :  { %v75_v28 = vpack.c.bf16 %v74_v27, %v73_v26  ;;  %p632_p5 = scmp.ne.s32.totalorder %s499_s5, %s631_s16  ;;  %p637_p7 = scmp.lt.s32.totalorder %s631_s16, %s631_s16 }
  0x2a   :  { %281 = vmatpush1.bf16.msra.mxu1 %v604_v29 }
  0x2b   :  { %565 = vmatmul.mubr.msk.bf16.vlgmr.msra.gmra.mrb[0].mxu0 %vm29_vm1, %v75_v28  ;;  %282 = vmatprep.subr.bf16.mxu1 %v605_v30  ;;  %p638_p8 = por %p637_p7, %p636_p6 }
  0x2c   :  { %570 = vmatprep.mubr.msk.f32.mxu0 %vm659_vm0, %v658_v1 }
  0x2d   :  { %p639_p9 = pnand %p638_p8, %p632_p5 }
  0x2e   :  { %283 = vmatpush1.bf16.msra.mxu1 %v607_v31 }
  0x2f   :  { %284 = vmatprep.subr.bf16.mxu1 %v608_v32 }
  0x32   :  { %285 = vmatpush1.bf16.msra.mxu1 %v610_v33 }
  0xfe   :  { %v152_v36 = vpop.f32.mrb[0].mxu0 }
  0xff   :  { %v153_v37 = vadd.f32 %v525_v35, %v152_v36  ;;  %v566_v38 = vpop.f32.mrb[1].mxu0 }
 0x100   :  { %v155_v39 = vpop.f32.mrb[2].mxu0 }
 0x101   :  { %v156_v40 = vadd.f32 %v525_v35, %v155_v39  ;;  %v567_v41 = vpop.f32.mrb[3].mxu0  ;;  %v159_v42 = vmax.f32 %v153_v37, 0.0 }
 0x103   :  { %v160_v43 = vmax.f32 %v156_v40, 0.0 }
 0x105   :  { %v161_v44 = vpack.c.bf16 %v160_v43, %v159_v42 }
 0x107   :  { %303 = vmatmul.mubr.bf16.vlgmr.msra.gmra.mrb[0].mxu1 %v161_v44 }
 0x1da   :  { %v304_v51 = vpop.f32.mrb[0].mxu1 }
 0x1db   :  { %v306_v52 = vpop.f32.mrb[1].mxu1  ;;  %v305_v61 = vadd.f32 %v304_v51, %v183_v55 }
 0x1dc   :  { %v307_v53 = vadd.f32 %v306_v52, %v187_v49  ;;  %v308_v54 = vpop.f32.mrb[2].mxu1 }
 0x1dd   :  { %v309_v56 = vpop.f32.mrb[3].mxu1  ;;  %v401_v63 = vrot.slane %v305_v61, 5 }
 0x1de   :  { %v314_v57 = vrot.slane %v307_v53, 1  ;;  %v310_v58 = vadd.f32 %v309_v56, %v187_v49  ;;  %v405_v59 = vrot.slane %v307_v53, 6 }
 0x1e0   :  { %v406_v60 = vrot.slane %v310_v58, 6  ;;  %569 = vmatpush3.xpose.msra.mxu0 %v314_v57 }
 0x1e1   :  { %573 = vmatprep.subr.mxu0 %v658_v1 }
 0x1e2   :  { %v407_v62 = vsel %vm404_vm3, %v405_v59, %v406_v60 }
 0x1e3   :  { %571 = vmatmul.mubr.f32.vlgmr.msra.gmra.mrb[4].mxu0 %v305_v61 }
 0x1e4   :  { %574 = vmatpush3.xpose.msra.mxu0 %v407_v62  ;;  %575 = vmatprep.mubr.msk.f32.mxu0 %vm659_vm0, %v658_v1 }
 0x1e7   :  { %576 = vmatmul.mubr.f32.vlgmr.msra.gmra.mrb[6].mxu0 %v401_v63 }
 0x2b6   :  { %v382_v0 = vpop.f32.mrb[4].mxu0 }
 0x2b7   :  { %v572_v2 = vpop.f32.mrb[5].mxu0  ;;  %v387_v3 = vsel %vm386_vm4, %v382_v0, -inf }
 0x2b8   :  { %388 = vmax.xlane.f32.xlu0 %v387_v3 }
 0x2ba   :  { %v475_v4 = vpop.f32.mrb[6].mxu0 }
 0x2bb   :  { %v577_v5 = vpop.f32.mrb[7].mxu0  ;;  %v479_v6 = vsel %vm386_vm4, %v475_v4, -inf }
 0x2bc   :  { %480 = vmax.xlane.f32.xlu0 %v479_v6 }
 0x345   :  { %v389_v7 = vpop.xlane.xlu0 %388 }
 0x346   :  { %v390_v8 = vsub.f32 %v382_v0, %v389_v7 }
 0x348   :  { %v391_v9 = vmul.f32 1.442695, %v390_v8 }
 0x349   :  { %v481_v10 = vpop.xlane.xlu0 %480 }
 0x34a   :  { %611 = vpow2.f32 %v391_v9  ;;  %v482_v11 = vsub.f32 %v475_v4, %v481_v10 }
 0x34c   :  { %v483_v1 = vmul.f32 1.442695, %v482_v11 }
 0x34e   :  { %613 = vpow2.f32 %v483_v1 }
 0x354   :  { %v612_v12 = vpop.eup %611 }
 0x355   :  { %v393_v13 = vsel %vm386_vm4, %v612_v12, 0.0 }
 0x356   :  { %394 = vadd.xlane.f32.xlu1 %v393_v13 }
 0x358   :  { %v614_v14 = vpop.eup %613 }
 0x359   :  { %v485_v15 = vsel %vm386_vm4, %v614_v14, 0.0 }
 0x35a   :  { %486 = vadd.xlane.f32.xlu1 %v485_v15 }
 0x3e3   :  { %v395_v16 = vpop.xlane.xlu1 %394 }
 0x3e4   :  { %615 = vlog2.f32 %v395_v16 }
 0x3e7   :  { %v487_v17 = vpop.xlane.xlu1 %486 }
 0x3e8   :  { %617 = vlog2.f32 %v487_v17 }
 0x3ee   :  { %v616_v18 = vpop.eup %615 }
 0x3ef   :  { %v397_v19 = vmul.f32 0.6931472, %v616_v18 }
 0x3f1   :  { %v398_v20 = vsub.f32 %v390_v8, %v397_v19 }
 0x3f2   :  { %v618_v21 = vpop.eup %617 }
 0x3f3   :  { %399 = vst.msk [vmem:[#allocation5] sm:$0x1] %vm386_vm4, %v398_v20  ;;  %v489_v22 = vmul.f32 0.6931472, %v618_v21 }
 0x3f5   :  { %v490_v23 = vsub.f32 %v482_v11, %v489_v22 }
 0x3f7   :  { %491 = vst.msk [vmem:[#allocation5 + $0x1] sm:$0x1] %vm386_vm4, %v490_v23 }
 0x3f8   :  { %642 = shalt.err (!%p639_p9)
}
 0x3f9   :  { %s643_s21 = scalar_lea.hbm %s872_s6, 32 }
 0x3fa   :  { %p644_p10 = scmp.ne.s32.totalorder %s872_s6, %s643_s21  ;;  %p647_p11 = scmp.lt.u32.totalorder %s643_s21, %s872_s6 }
 0x3fc   :  { %p649_p12 = pnand %p647_p11, %p644_p10 }
 0x3fe   :  { %652 = shalt.err (!%p649_p12)
}
 0x3ff   :  { %501 = dma.vmem_to_hbm [thread:$0]  %s499_s5, 32, %s872_s6, [#allocation6]  }
 0x400   :  { %655 = dma.done.wait [#allocation6], 32  }
 0x401   :  { %656 = vsyncadd [#allocation6], 4294967264 }
 0x402   :  { %505 = vsyncpa [#allocation6], 1 }

</bundles_post_ra>
